<compile_context>
chip_gen: v7x
topology: tpu7x:2x2x1
jax: 0.10.0
libtpu: 0.0.40
codegen_flags: <defaults>
</compile_context>

<pallas_src>
import functools
import math

import jax
import jax.numpy as jnp
from jax.experimental import pallas as pl
from jax.experimental.pallas import tpu as pltpu

# Constants of the listing-faithful tanh GELU (note: sqrt(2/3.14), NOT
# sqrt(2/pi)), folded at trace time.
_C1 = math.sqrt(2.0 / 3.14)
_C2 = _C1 * 0.044715


def _gelu_math(x):
    # 0.5*x*(1 + tanh(c*(x + 0.044715*x^3)))
    #   == x * (0.5 + 0.5*tanh(x*(c1 + c2*x*x)))   (1-2 fewer vmuls / element)
    inner = x * (_C1 + _C2 * (x * x))
    return x * (0.5 + 0.5 * jnp.tanh(inner))


def _gelu_kernel(x_ref, o_ref, *, compute_dtype):
    x = x_ref[...].astype(compute_dtype)
    o_ref[...] = _gelu_math(x).astype(o_ref.dtype)


def _pick_lane_width(n):
    """Widest lane-dense width in {1024,512,256,128} dividing n (else None)."""
    for cand in (1024, 512, 256, 128):
        if n % cand == 0:
            return cand
    return None


def _gelu_pallas_2d(x2d, compute_dtype, block_bytes):
    """Runs the elementwise GELU kernel on a lane-dense (rows, C) slab."""
    rows, C = x2d.shape
    itemsize = jnp.dtype(x2d.dtype).itemsize

    # Sublane packing granularity: f32 -> 8 rows, bf16 -> 16, int8/fp8 -> 32.
    rows_mult = max(8, 32 // itemsize)
    rows_budget = max(
        rows_mult, (block_bytes // (C * itemsize)) // rows_mult * rows_mult
    )
    # One block if it fits the budget; otherwise split into ~block_bytes tiles
    # (pipelining / v7x 2-TC sharding then happens naturally across blocks).
    tile_rows = rows if rows <= rows_budget else rows_budget
    grid = (pl.cdiv(rows, tile_rows),)

    kernel = functools.partial(_gelu_kernel, compute_dtype=compute_dtype)
    return pl.pallas_call(
        kernel,
        out_shape=jax.ShapeDtypeStruct((rows, C), x2d.dtype),
        grid_spec=pltpu.PrefetchScalarGridSpec(
            num_scalar_prefetch=0,
            grid=grid,
            in_specs=[pl.BlockSpec((tile_rows, C), lambda i: (i, 0))],
            out_specs=pl.BlockSpec((tile_rows, C), lambda i: (i, 0)),
        ),
        compiler_params=pltpu.CompilerParams(
            dimension_semantics=("parallel",),
        ),
        cost_estimate=pl.CostEstimate(
            flops=8 * rows * C,
            transcendentals=rows * C,
            bytes_accessed=2 * rows * C * itemsize,
        ),
    )(x2d)


def gelu_pallas(x, *, block_bytes=2 * 1024 * 1024, min_pallas_elems=8192):
    """Applies the listing's tanh-approx GELU elementwise via a Pallas kernel."""
    orig_shape = x.shape
    n = x.size
    if n == 0:
        return x

    # bf16 stays in bf16 (HBM-bound either way; halves VPU/EUP + vreg work on
    # v6e/v7x); everything else computes in f32.
    compute_dtype = jnp.bfloat16 if x.dtype == jnp.bfloat16 else jnp.float32

    if n < min_pallas_elems:
        # Tiny input: kernel launch + grid overhead dominates -> plain XLA.
        return _gelu_math(x.astype(compute_dtype)).astype(x.dtype)

    flat = x.reshape(-1)
    C = _pick_lane_width(n)
    if C is not None:
        out_flat = _gelu_pallas_2d(
            flat.reshape(n // C, C), compute_dtype, block_bytes
        ).reshape(-1)
    else:
        # Element count not a multiple of 128: run the kernel on the divisible
        # prefix, finish the (<128 element) tail with plain XLA.  GELU is
        # elementwise so this is exact, and it avoids a full pad + slice.
        C = 128
        prefix = (n // C) * C
        head = _gelu_pallas_2d(
            flat[:prefix].reshape(prefix // C, C), compute_dtype, block_bytes
        ).reshape(-1)
        tail = _gelu_math(flat[prefix:].astype(compute_dtype)).astype(x.dtype)
        out_flat = jnp.concatenate([head, tail])

    return out_flat.reshape(orig_shape)


def gelu_reference(x):
    xf = x.astype(jnp.float32)
    return 0.5 * xf * (
        1.0
        + jnp.tanh(
            jnp.sqrt(jnp.float32(2.0 / 3.14)) * (xf + 0.044715 * xf ** 3)
        )
    )


if __name__ == "__main__":
    key = jax.random.PRNGKey(0)
    k1, k2, k3 = jax.random.split(key, 3)

    # Shapes consistent with an LLM FFN activation use of this module.
    tests = [
        jax.random.normal(k1, (2, 8, 32), dtype=jnp.float32),    # tiny -> XLA bypass
        jax.random.normal(k2, (4, 64, 256), dtype=jnp.float32),  # Pallas kernel path
        jax.random.normal(k3, (5, 41, 67), dtype=jnp.float32),   # prefix + tail path
    ]

    for x in tests:
        y = gelu_pallas(x)
        jax.block_until_ready(y)
        y_ref = gelu_reference(x)
        assert y.shape == x.shape and y.dtype == x.dtype
        assert jnp.allclose(y.astype(jnp.float32), y_ref, atol=1e-5, rtol=1e-5), (
            "mismatch vs reference"
        )

    print("KERNEL_OK")
</pallas_src>

<mosaic_0001>
module attributes {stable_mosaic.version = 11 : i64} {
  func.func @_gelu_kernel(%arg0: i32, %arg1: memref<64x1024xf32, #tpu.memory_space<vmem>>, %arg2: memref<64x1024xf32, #tpu.memory_space<vmem>>) attributes {dimension_semantics = [#tpu.dimension_semantics<parallel>], iteration_bounds = array<i64: 1>, scalar_prefetch = 0 : i64, scratch_operands = 0 : i64, tpu.core_type = #tpu.core_type<tc>, window_params = [{transform_indices = @transform_0, window_bounds = array<i64: 64, 1024>}, {transform_indices = @transform_1, window_bounds = array<i64: 64, 1024>}]} {
    %c0 = arith.constant 0 : index
    %c0_0 = arith.constant 0 : index
    %0 = vector.load %arg1[%c0, %c0_0] : memref<64x1024xf32, #tpu.memory_space<vmem>>, vector<64x1024xf32>
    %1 = arith.mulf %0, %0 : vector<64x1024xf32>
    %cst = arith.constant 0.0356864557 : f32
    %2 = vector.broadcast %cst : f32 to vector<64x1024xf32>
    %3 = arith.mulf %2, %1 : vector<64x1024xf32>
    %cst_1 = arith.constant 0.798086882 : f32
    %4 = vector.broadcast %cst_1 : f32 to vector<64x1024xf32>
    %5 = arith.addf %4, %3 : vector<64x1024xf32>
    %6 = arith.mulf %0, %5 : vector<64x1024xf32>
    %7 = math.tanh %6 : vector<64x1024xf32>
    %cst_2 = arith.constant 5.000000e-01 : f32
    %8 = vector.broadcast %cst_2 : f32 to vector<64x1024xf32>
    %9 = arith.mulf %8, %7 : vector<64x1024xf32>
    %cst_3 = arith.constant 5.000000e-01 : f32
    %10 = vector.broadcast %cst_3 : f32 to vector<64x1024xf32>
    %11 = arith.addf %10, %9 : vector<64x1024xf32>
    %12 = arith.mulf %0, %11 : vector<64x1024xf32>
    %c0_4 = arith.constant 0 : index
    %c0_5 = arith.constant 0 : index
    %13 = vector.load %arg2[%c0_4, %c0_5] : memref<64x1024xf32, #tpu.memory_space<vmem>>, vector<64x1024xf32>
    tpu.vector_store %arg2[%c0_4, %c0_5], %12 {strides = array<i32>} : memref<64x1024xf32, #tpu.memory_space<vmem>>, vector<64x1024xf32>,
    return
  }
  func.func @transform_0(%arg0: i32) -> (i32, i32) {
    %c0_i32 = arith.constant 0 : i32
    %c0_i32_0 = arith.constant 0 : i32
    return %arg0, %c0_i32 : i32, i32
  }
  func.func @transform_1(%arg0: i32) -> (i32, i32) {
    %c0_i32 = arith.constant 0 : i32
    %c0_i32_0 = arith.constant 0 : i32
    return %arg0, %c0_i32 : i32, i32
  }
}

</mosaic_0001>

<bundles_post_ra>
// kernel: tpu_custom_call.1
= control target key start
LH: loop header
LB: loop body
LE: loop exit
PB: predicated region body
PF: predicated region fallthrough
CT: control target
= control target key end

     0   :  { %6 = vsyncpa [#allocation3], 0  ;;  %s1288_s0 = inlined_call_operand.hbm [shape: f32[64,1024], index: 0, kind: input, shape index: {}]   ;;  %s1289_s1 = inlined_call_operand.hbm [shape: f32[64,1024], index: 1, kind: output, shape index: {}]  }
   0x1   :  { %7 = vsyncpa [#allocation4], 0  ;;  %s860_s6 = smov [#allocation2]   ;;  %s812_s10 = scalar_lea.hbm %s1288_s0, 8192 }
   0x2   :  { %s13_s7 = sshll.u32 %s860_s6, 4  ;;  %p813_p0 = scmp.ne.s32.totalorder %s1288_s0, %s812_s10  ;;  %s14_s7 = int_to_ptr.vmem [resolvable:$true] %s13_s7 }
   0x3   :  { %p816_p1 = scmp.lt.u32.totalorder %s812_s10, %s1288_s0 }
   0x5   :  { %p818_p2 = pnand %p816_p1, %p813_p0 }
   0x7   :  { %821 = shalt.err (!%p818_p2)
}
   0x8   :  { %s822_s15 = scalar_lea.vmem %s14_s7, 8192  ;;  %p827_p4 = scmp.lt.s32.totalorder %s14_s7, %s14_s7 }
   0x9   :  { %p823_p3 = scmp.ne.s32.totalorder %s14_s7, %s822_s15  ;;  %p828_p5 = scmp.lt.s32.totalorder %s822_s15, %s822_s15 }
   0xb   :  { %p829_p6 = por %p828_p5, %p827_p4 }
   0xd   :  { %p830_p7 = pnand %p829_p6, %p823_p3 }
   0xf   :  { %833 = shalt.err (!%p830_p7)
}
  0x10   :  { %s861_s16 = smov 1024   ;;  %s862_s17 = smov 64  }
  0x11   :  { %19 = dma.hbm_to_vmem [thread:$0]  %s1288_s0, 8192, %s14_s7, [#allocation3], %s861_s16, %s861_s16, %s862_s17  }
  0x12   :  { %856 = dma.done.wait [#allocation3], 8192  }
  0x13   :  { %857 = vsyncadd [#allocation3], 4294959104  ;;  %v889_v0 = vld [vmem:[#allocation2] sm:$0xff]  ;;  %v891_v1 = vld [vmem:[#allocation2 + $0x8] sm:$0xff]  ;;  %s863_s0 = smov [#allocation5]  }
  0x14   :  { %v893_v2 = vld [vmem:[#allocation2 + $0x10] sm:$0xff]  ;;  %v87_v3 = vmul.f32 %v889_v0, %v889_v0  ;;  %v88_v4 = vmul.f32 %v891_v1, %v891_v1  ;;  %v901_v6 = vld [vmem:[#allocation2 + $0x18] sm:$0xff]  ;;  %v903_v7 = vld [vmem:[#allocation2 + $0x20] sm:$0xff]  ;;  %s668_s20 = sshll.u32 %s863_s0, 4  ;;  %s669_s20 = int_to_ptr.vmem [resolvable:$true] %s668_s20 }
  0x15   :  { %v89_v5 = vmul.f32 %v893_v2, %v893_v2  ;;  %v905_v8 = vld [vmem:[#allocation2 + $0x28] sm:$0xff]  ;;  %v90_v9 = vmul.f32 %v901_v6, %v901_v6  ;;  %v91_v10 = vmul.f32 %v903_v7, %v903_v7  ;;  %v913_v12 = vld [vmem:[#allocation2 + $0x30] sm:$0xff]  ;;  %v915_v13 = vld [vmem:[#allocation2 + $0x38] sm:$0xff]  ;;  %s834_s21 = scalar_lea.vmem %s669_s20, 8192  ;;  %p839_p9 = scmp.lt.s32.totalorder %s669_s20, %s669_s20 }
  0x16   :  { %v92_v11 = vmul.f32 %v905_v8, %v905_v8  ;;  %v917_v14 = vld [vmem:[#allocation2 + $0x40] sm:$0xff]  ;;  %v151_v15 = vmul.f32 0.035686456, %v87_v3  ;;  %v152_v16 = vmul.f32 0.035686456, %v88_v4  ;;  %v93_v18 = vmul.f32 %v913_v12, %v913_v12  ;;  %v928_v34 = vld [vmem:[#allocation2 + $0x48] sm:$0xff]  ;;  %p835_p8 = scmp.ne.s32.totalorder %s669_s20, %s834_s21  ;;  %p840_p10 = scmp.lt.s32.totalorder %s834_s21, %s834_s21 }
  0x17   :  { %v153_v17 = vmul.f32 0.035686456, %v89_v5  ;;  %v154_v19 = vmul.f32 0.035686456, %v90_v9  ;;  %v155_v20 = vmul.f32 0.035686456, %v91_v10  ;;  %v94_v22 = vmul.f32 %v915_v13, %v915_v13 }
  0x18   :  { %v156_v21 = vmul.f32 0.035686456, %v92_v11  ;;  %v215_v23 = vadd.f32 0.7980869, %v151_v15  ;;  %v216_v24 = vadd.f32 0.7980869, %v152_v16  ;;  %v95_v26 = vmul.f32 %v917_v14, %v917_v14  ;;  %p841_p11 = por %p840_p10, %p839_p9 }
  0x19   :  { %v217_v25 = vadd.f32 0.7980869, %v153_v17  ;;  %v218_v27 = vadd.f32 0.7980869, %v154_v19  ;;  %v219_v28 = vadd.f32 0.7980869, %v155_v20  ;;  %v96_v43 = vmul.f32 %v928_v34, %v928_v34 }
  0x1a   :  { %v220_v29 = vadd.f32 0.7980869, %v156_v21  ;;  %v279_v30 = vmul.f32 %v215_v23, %v889_v0  ;;  %v280_v31 = vmul.f32 %v216_v24, %v891_v1  ;;  %v157_v33 = vmul.f32 0.035686456, %v93_v18  ;;  %v930_v35 = vld [vmem:[#allocation2 + $0x50] sm:$0xff]  ;;  %v932_v36 = vld [vmem:[#allocation2 + $0x58] sm:$0xff]  ;;  %p842_p12 = pnand %p841_p11, %p835_p8 }
  0x1b   :  { %v281_v32 = vmul.f32 %v217_v25, %v893_v2  ;;  %v282_v37 = vmul.f32 %v218_v27, %v901_v6  ;;  %v283_v38 = vmul.f32 %v219_v28, %v903_v7  ;;  %v158_v40 = vmul.f32 0.035686456, %v94_v22  ;;  %v943_v47 = vld [vmem:[#allocation2 + $0x60] sm:$0xff]  ;;  %v946_v51 = vld [vmem:[#allocation2 + $0x68] sm:$0xff]  ;;  %v949_v55 = vld [vmem:[#allocation2 + $0x70] sm:$0xff] }
  0x1c   :  { %v284_v39 = vmul.f32 %v220_v29, %v905_v8  ;;  %684 = vtanh.f32 %v279_v30  ;;  %v221_v41 = vadd.f32 0.7980869, %v157_v33  ;;  %v159_v42 = vmul.f32 0.035686456, %v95_v26  ;;  %v956_v62 = vld [vmem:[#allocation2 + $0x78] sm:$0xff]  ;;  %v961_v5 = vld [vmem:[#allocation2 + $0x80] sm:$0xff] }
  0x1d   :  { %686 = vtanh.f32 %v280_v31  ;;  %v222_v44 = vadd.f32 0.7980869, %v158_v40  ;;  %v97_v45 = vmul.f32 %v930_v35, %v930_v35  ;;  %v98_v46 = vmul.f32 %v932_v36, %v932_v36  ;;  %v963_v9 = vld [vmem:[#allocation2 + $0x88] sm:$0xff] }
  0x1e   :  { %688 = vtanh.f32 %v281_v32  ;;  %v285_v48 = vmul.f32 %v221_v41, %v913_v12  ;;  %v223_v49 = vadd.f32 0.7980869, %v159_v42  ;;  %v160_v50 = vmul.f32 0.035686456, %v96_v43 }
  0x1f   :  { %690 = vtanh.f32 %v282_v37  ;;  %v286_v52 = vmul.f32 %v222_v44, %v915_v13  ;;  %v161_v53 = vmul.f32 0.035686456, %v97_v45  ;;  %v162_v54 = vmul.f32 0.035686456, %v98_v46 }
  0x20   :  { %692 = vtanh.f32 %v283_v38  ;;  %v287_v56 = vmul.f32 %v223_v49, %v917_v14  ;;  %v224_v57 = vadd.f32 0.7980869, %v160_v50  ;;  %v99_v58 = vmul.f32 %v943_v47, %v943_v47 }
  0x21   :  { %694 = vtanh.f32 %v284_v39  ;;  %v225_v59 = vadd.f32 0.7980869, %v161_v53  ;;  %v226_v60 = vadd.f32 0.7980869, %v162_v54  ;;  %v100_v61 = vmul.f32 %v946_v51, %v946_v51 }
  0x22   :  { %696 = vtanh.f32 %v285_v48  ;;  %v288_v63 = vmul.f32 %v224_v57, %v928_v34  ;;  %v163_v3 = vmul.f32 0.035686456, %v99_v58  ;;  %v101_v4 = vmul.f32 %v949_v55, %v949_v55  ;;  %v980_v57 = vld [vmem:[#allocation2 + $0x90] sm:$0xff] }
  0x23   :  { %698 = vtanh.f32 %v286_v52  ;;  %v289_v10 = vmul.f32 %v225_v59, %v930_v35  ;;  %v290_v11 = vmul.f32 %v226_v60, %v932_v36  ;;  %v164_v15 = vmul.f32 0.035686456, %v100_v61 }
  0x24   :  { %700 = vtanh.f32 %v287_v56  ;;  %v227_v16 = vadd.f32 0.7980869, %v163_v3  ;;  %v165_v17 = vmul.f32 0.035686456, %v101_v4  ;;  %v102_v18 = vmul.f32 %v956_v62, %v956_v62 }
  0x25   :  { %702 = vtanh.f32 %v288_v63  ;;  %v228_v19 = vadd.f32 0.7980869, %v164_v15  ;;  %v103_v20 = vmul.f32 %v961_v5, %v961_v5  ;;  %v104_v21 = vmul.f32 %v963_v9, %v963_v9 }
  0x26   :  { %v685_v22 = vpop.eup %684  ;;  %704 = vtanh.f32 %v289_v10  ;;  %v291_v23 = vmul.f32 %v227_v16, %v943_v47  ;;  %v229_v24 = vadd.f32 0.7980869, %v165_v17  ;;  %v166_v25 = vmul.f32 0.035686456, %v102_v18 }
  0x27   :  { %v687_v26 = vpop.eup %686  ;;  %v407_v27 = vmul.f32 0.5, %v685_v22  ;;  %706 = vtanh.f32 %v290_v11  ;;  %v292_v28 = vmul.f32 %v228_v19, %v946_v51  ;;  %v167_v29 = vmul.f32 0.035686456, %v103_v20 }
  0x28   :  { %v689_v30 = vpop.eup %688  ;;  %v408_v31 = vmul.f32 0.5, %v687_v26  ;;  %708 = vtanh.f32 %v291_v23  ;;  %v293_v32 = vmul.f32 %v229_v24, %v949_v55  ;;  %v230_v33 = vadd.f32 0.7980869, %v166_v25 }
  0x29   :  { %v691_v37 = vpop.eup %690  ;;  %v471_v38 = vadd.f32 0.5, %v407_v27  ;;  %v409_v39 = vmul.f32 0.5, %v689_v30  ;;  %710 = vtanh.f32 %v292_v28  ;;  %v231_v40 = vadd.f32 0.7980869, %v167_v29 }
  0x2a   :  { %v693_v41 = vpop.eup %692  ;;  %v472_v42 = vadd.f32 0.5, %v408_v31  ;;  %v410_v43 = vmul.f32 0.5, %v691_v37  ;;  %712 = vtanh.f32 %v293_v32  ;;  %v294_v44 = vmul.f32 %v230_v33, %v956_v62  ;;  %v992_v37 = vld [vmem:[#allocation2 + $0x98] sm:$0xff] }
  0x2b   :  { %v695_v45 = vpop.eup %694  ;;  %v535_v46 = vmul.f32 %v471_v38, %v889_v0  ;;  %v473_v48 = vadd.f32 0.5, %v409_v39  ;;  %v411_v49 = vmul.f32 0.5, %v693_v41  ;;  %v295_v50 = vmul.f32 %v231_v40, %v961_v5 }
  0x2c   :  { %v697_v52 = vpop.eup %696  ;;  %v536_v53 = vmul.f32 %v472_v42, %v891_v1  ;;  %v474_v54 = vadd.f32 0.5, %v410_v43  ;;  %v412_v56 = vmul.f32 0.5, %v695_v45  ;;  %714 = vtanh.f32 %v294_v44 }
  0x2d   :  { %v699_v58 = vpop.eup %698  ;;  %599 = vst [vmem:[#allocation5] sm:$0xff] %v535_v46  ;;  %v537_v59 = vmul.f32 %v473_v48, %v893_v2  ;;  %v475_v60 = vadd.f32 0.5, %v411_v49  ;;  %v413_v61 = vmul.f32 0.5, %v697_v52  ;;  %716 = vtanh.f32 %v295_v50  ;;  %v1004_v49 = vld [vmem:[#allocation2 + $0xa8] sm:$0xff]  ;;  %v1006_v50 = vld [vmem:[#allocation2 + $0xb0] sm:$0xff] }
  0x2e   :  { %v701_v0 = vpop.eup %700  ;;  %600 = vst [vmem:[#allocation5 + $0x8] sm:$0xff] %v536_v53  ;;  %v538_v63 = vmul.f32 %v474_v54, %v901_v6  ;;  %v476_v3 = vadd.f32 0.5, %v412_v56  ;;  %v414_v4 = vmul.f32 0.5, %v699_v58  ;;  %v168_v10 = vmul.f32 0.035686456, %v104_v21  ;;  %v1009_v56 = vld [vmem:[#allocation2 + $0xb8] sm:$0xff] }
  0x2f   :  { %v703_v1 = vpop.eup %702  ;;  %601 = vst [vmem:[#allocation5 + $0x10] sm:$0xff] %v537_v59  ;;  %v539_v11 = vmul.f32 %v475_v60, %v903_v7  ;;  %v477_v15 = vadd.f32 0.5, %v413_v61  ;;  %v415_v16 = vmul.f32 0.5, %v701_v0  ;;  %v105_v17 = vmul.f32 %v980_v57, %v980_v57  ;;  %v1012_v61 = vld [vmem:[#allocation2 + $0xc0] sm:$0xff] }
  0x30   :  { %v705_v2 = vpop.eup %704  ;;  %602 = vst [vmem:[#allocation5 + $0x18] sm:$0xff] %v538_v63  ;;  %v540_v18 = vmul.f32 %v476_v3, %v905_v8  ;;  %v478_v19 = vadd.f32 0.5, %v414_v4  ;;  %v416_v20 = vmul.f32 0.5, %v703_v1  ;;  %v232_v22 = vadd.f32 0.7980869, %v168_v10 }
  0x31   :  { %v707_v6 = vpop.eup %706  ;;  %603 = vst [vmem:[#allocation5 + $0x20] sm:$0xff] %v539_v11  ;;  %v541_v21 = vmul.f32 %v477_v15, %v913_v12  ;;  %v479_v23 = vadd.f32 0.5, %v415_v16  ;;  %v417_v24 = vmul.f32 0.5, %v705_v2  ;;  %v169_v25 = vmul.f32 0.035686456, %v105_v17  ;;  %v994_v12 = vld [vmem:[#allocation2 + $0xa0] sm:$0xff] }
  0x32   :  { %v709_v7 = vpop.eup %708  ;;  %604 = vst [vmem:[#allocation5 + $0x28] sm:$0xff] %v540_v18  ;;  %v542_v26 = vmul.f32 %v478_v19, %v915_v13  ;;  %v480_v27 = vadd.f32 0.5, %v416_v20  ;;  %v418_v28 = vmul.f32 0.5, %v707_v6  ;;  %v296_v29 = vmul.f32 %v232_v22, %v963_v9  ;;  %v1021_v11 = vld [vmem:[#allocation2 + $0xc8] sm:$0xff]  ;;  %v1026_v2 = vld [vmem:[#allocation2 + $0xd0] sm:$0xff]  ;;  %v1028_v18 = vld [vmem:[#allocation2 + $0xd8] sm:$0xff] }
  0x33   :  { %v711_v30 = vpop.eup %710  ;;  %605 = vst [vmem:[#allocation5 + $0x30] sm:$0xff] %v541_v21  ;;  %v543_v8 = vmul.f32 %v479_v23, %v917_v14  ;;  %v481_v31 = vadd.f32 0.5, %v417_v24  ;;  %v419_v32 = vmul.f32 0.5, %v709_v7  ;;  %v233_v33 = vadd.f32 0.7980869, %v169_v25 }
  0x34   :  { %v713_v38 = vpop.eup %712  ;;  %606 = vst [vmem:[#allocation5 + $0x38] sm:$0xff] %v542_v26  ;;  %v544_v39 = vmul.f32 %v480_v27, %v928_v34  ;;  %v482_v13 = vadd.f32 0.5, %v418_v28  ;;  %v420_v40 = vmul.f32 0.5, %v711_v30  ;;  %718 = vtanh.f32 %v296_v29  ;;  %v1039_v27 = vld [vmem:[#allocation2 + $0xe0] sm:$0xff] }
  0x35   :  { %607 = vst [vmem:[#allocation5 + $0x40] sm:$0xff] %v543_v8  ;;  %v545_v41 = vmul.f32 %v481_v31, %v930_v35  ;;  %v483_v42 = vadd.f32 0.5, %v419_v32  ;;  %v421_v43 = vmul.f32 0.5, %v713_v38  ;;  %v297_v14 = vmul.f32 %v233_v33, %v980_v57 }
  0x36   :  { %v715_v44 = vpop.eup %714  ;;  %608 = vst [vmem:[#allocation5 + $0x48] sm:$0xff] %v544_v39  ;;  %v546_v45 = vmul.f32 %v482_v13, %v932_v36  ;;  %v484_v46 = vadd.f32 0.5, %v420_v40  ;;  %v106_v48 = vmul.f32 %v992_v37, %v992_v37  ;;  %v107_v34 = vmul.f32 %v994_v12, %v994_v12 }
  0x37   :  { %v717_v35 = vpop.eup %716  ;;  %609 = vst [vmem:[#allocation5 + $0x50] sm:$0xff] %v545_v41  ;;  %v547_v52 = vmul.f32 %v483_v42, %v943_v47  ;;  %v485_v53 = vadd.f32 0.5, %v421_v43  ;;  %v422_v54 = vmul.f32 0.5, %v715_v44  ;;  %720 = vtanh.f32 %v297_v14  ;;  %v1047_v14 = vld [vmem:[#allocation2 + $0xe8] sm:$0xff]  ;;  %v1049_v44 = vld [vmem:[#allocation2 + $0xf0] sm:$0xff] }
  0x38   :  { %610 = vst [vmem:[#allocation5 + $0x58] sm:$0xff] %v546_v45  ;;  %v548_v36 = vmul.f32 %v484_v46, %v946_v51  ;;  %v423_v58 = vmul.f32 0.5, %v717_v35  ;;  %v170_v59 = vmul.f32 0.035686456, %v106_v48  ;;  %v171_v60 = vmul.f32 0.035686456, %v107_v34 }
  0x39   :  { %611 = vst [vmem:[#allocation5 + $0x60] sm:$0xff] %v547_v52  ;;  %v549_v0 = vmul.f32 %v485_v53, %v949_v55  ;;  %v486_v63 = vadd.f32 0.5, %v422_v54  ;;  %v108_v47 = vmul.f32 %v1004_v49, %v1004_v49  ;;  %v109_v3 = vmul.f32 %v1006_v50, %v1006_v50  ;;  %v1052_v34 = vld [vmem:[#allocation2 + $0xf8] sm:$0xff]  ;;  %v1055_v54 = vld [vmem:[#allocation2 + $0x100] sm:$0xff] }
  0x3a   :  { %612 = vst [vmem:[#allocation5 + $0x68] sm:$0xff] %v548_v36  ;;  %v487_v4 = vadd.f32 0.5, %v423_v58  ;;  %v234_v10 = vadd.f32 0.7980869, %v170_v59  ;;  %v235_v1 = vadd.f32 0.7980869, %v171_v60  ;;  %v110_v51 = vmul.f32 %v1009_v56, %v1009_v56 }
  0x3b   :  { %613 = vst [vmem:[#allocation5 + $0x70] sm:$0xff] %v549_v0  ;;  %v550_v15 = vmul.f32 %v486_v63, %v956_v62  ;;  %v172_v55 = vmul.f32 0.035686456, %v108_v47  ;;  %v173_v16 = vmul.f32 0.035686456, %v109_v3  ;;  %v111_v17 = vmul.f32 %v1012_v61, %v1012_v61  ;;  %v1063_v60 = vld [vmem:[#allocation2 + $0x108] sm:$0xff] }
  0x3c   :  { %v551_v19 = vmul.f32 %v487_v4, %v961_v5  ;;  %v298_v20 = vmul.f32 %v234_v10, %v992_v37  ;;  %v299_v22 = vmul.f32 %v235_v1, %v994_v12  ;;  %v174_v6 = vmul.f32 0.035686456, %v110_v51  ;;  %v1068_v3 = vld [vmem:[#allocation2 + $0x110] sm:$0xff] }
  0x3d   :  { %614 = vst [vmem:[#allocation5 + $0x78] sm:$0xff] %v550_v15  ;;  %v236_v21 = vadd.f32 0.7980869, %v172_v55  ;;  %v237_v23 = vadd.f32 0.7980869, %v173_v16  ;;  %v112_v24 = vmul.f32 %v1021_v11, %v1021_v11  ;;  %v113_v26 = vmul.f32 %v1026_v2, %v1026_v2 }
  0x3e   :  { %v175_v62 = vmul.f32 0.035686456, %v111_v17  ;;  %v719_v25 = vpop.eup %718  ;;  %615 = vst [vmem:[#allocation5 + $0x80] sm:$0xff] %v551_v19  ;;  %722 = vtanh.f32 %v298_v20  ;;  %v238_v7 = vadd.f32 0.7980869, %v174_v6  ;;  %v114_v5 = vmul.f32 %v1028_v18, %v1028_v18 }
  0x3f   :  { %v424_v28 = vmul.f32 0.5, %v719_v25  ;;  %724 = vtanh.f32 %v299_v22  ;;  %v300_v29 = vmul.f32 %v236_v21, %v1004_v49  ;;  %v301_v30 = vmul.f32 %v237_v23, %v1006_v50 }
  0x40   :  { %v302_v8 = vmul.f32 %v238_v7, %v1009_v56  ;;  %v239_v31 = vadd.f32 0.7980869, %v175_v62  ;;  %v176_v32 = vmul.f32 0.035686456, %v112_v24  ;;  %v177_v33 = vmul.f32 0.035686456, %v113_v26 }
  0x41   :  { %v721_v38 = vpop.eup %720  ;;  %v488_v39 = vadd.f32 0.5, %v424_v28  ;;  %726 = vtanh.f32 %v300_v29  ;;  %v178_v13 = vmul.f32 0.035686456, %v114_v5  ;;  %v115_v40 = vmul.f32 %v1039_v27, %v1039_v27 }
  0x42   :  { %v425_v41 = vmul.f32 0.5, %v721_v38  ;;  %728 = vtanh.f32 %v301_v30  ;;  %v303_v42 = vmul.f32 %v239_v31, %v1012_v61  ;;  %v240_v43 = vadd.f32 0.7980869, %v176_v32 }
  0x43   :  { %v552_v45 = vmul.f32 %v488_v39, %v963_v9  ;;  %730 = vtanh.f32 %v302_v8  ;;  %v241_v46 = vadd.f32 0.7980869, %v177_v33  ;;  %v242_v48 = vadd.f32 0.7980869, %v178_v13 }
  0x44   :  { %v489_v35 = vadd.f32 0.5, %v425_v41  ;;  %732 = vtanh.f32 %v303_v42  ;;  %v304_v52 = vmul.f32 %v240_v43, %v1021_v11  ;;  %v179_v53 = vmul.f32 0.035686456, %v115_v40 }
  0x45   :  { %616 = vst [vmem:[#allocation5 + $0x88] sm:$0xff] %v552_v45  ;;  %v305_v36 = vmul.f32 %v241_v46, %v1026_v2  ;;  %v306_v58 = vmul.f32 %v242_v48, %v1028_v18  ;;  %v116_v9 = vmul.f32 %v1047_v14, %v1047_v14  ;;  %v117_v59 = vmul.f32 %v1049_v44, %v1049_v44 }
  0x46   :  { %v553_v0 = vmul.f32 %v489_v35, %v980_v57  ;;  %734 = vtanh.f32 %v304_v52  ;;  %v243_v63 = vadd.f32 0.7980869, %v179_v53  ;;  %v118_v47 = vmul.f32 %v1052_v34, %v1052_v34  ;;  %v1085_v53 = vld [vmem:[#allocation2 + $0x118] sm:$0xff] }
  0x47   :  { %736 = vtanh.f32 %v305_v36  ;;  %v180_v4 = vmul.f32 0.035686456, %v116_v9  ;;  %v181_v10 = vmul.f32 0.035686456, %v117_v59  ;;  %v119_v1 = vmul.f32 %v1055_v54, %v1055_v54  ;;  %v1088_v59 = vld [vmem:[#allocation2 + $0x120] sm:$0xff] }
  0x48   :  { %v723_v51 = vpop.eup %722  ;;  %617 = vst [vmem:[#allocation5 + $0x90] sm:$0xff] %v553_v0  ;;  %738 = vtanh.f32 %v306_v58  ;;  %v307_v15 = vmul.f32 %v243_v63, %v1039_v27  ;;  %v182_v55 = vmul.f32 0.035686456, %v118_v47  ;;  %v120_v57 = vmul.f32 %v1063_v60, %v1063_v60  ;;  %v1090_v0 = vld [vmem:[#allocation2 + $0x128] sm:$0xff] }
  0x49   :  { %v725_v16 = vpop.eup %724  ;;  %v426_v17 = vmul.f32 0.5, %v723_v51  ;;  %v244_v19 = vadd.f32 0.7980869, %v180_v4  ;;  %v245_v20 = vadd.f32 0.7980869, %v181_v10  ;;  %v121_v22 = vmul.f32 %v1068_v3, %v1068_v3 }
  0x4a   :  { %v427_v6 = vmul.f32 0.5, %v725_v16  ;;  %740 = vtanh.f32 %v307_v15  ;;  %v246_v21 = vadd.f32 0.7980869, %v182_v55  ;;  %v183_v23 = vmul.f32 0.035686456, %v119_v1 }
  0x4b   :  { %v727_v62 = vpop.eup %726  ;;  %v490_v24 = vadd.f32 0.5, %v426_v17  ;;  %v308_v25 = vmul.f32 %v244_v19, %v1047_v14  ;;  %v309_v7 = vmul.f32 %v245_v20, %v1049_v44  ;;  %v184_v26 = vmul.f32 0.035686456, %v120_v57  ;;  %v1101_v17 = vld [vmem:[#allocation2 + $0x130] sm:$0xff] }
  0x4c   :  { %v729_v5 = vpop.eup %728  ;;  %v491_v28 = vadd.f32 0.5, %v427_v6  ;;  %v428_v29 = vmul.f32 0.5, %v727_v62  ;;  %v310_v30 = vmul.f32 %v246_v21, %v1052_v34  ;;  %v247_v8 = vadd.f32 0.7980869, %v183_v23  ;;  %v1104_v6 = vld [vmem:[#allocation2 + $0x138] sm:$0xff] }
  0x4d   :  { %v731_v31 = vpop.eup %730  ;;  %v554_v32 = vmul.f32 %v490_v24, %v992_v37  ;;  %v429_v33 = vmul.f32 0.5, %v729_v5  ;;  %742 = vtanh.f32 %v308_v25  ;;  %v248_v38 = vadd.f32 0.7980869, %v184_v26 }
  0x4e   :  { %v733_v39 = vpop.eup %732  ;;  %v555_v13 = vmul.f32 %v491_v28, %v994_v12  ;;  %v492_v40 = vadd.f32 0.5, %v428_v29  ;;  %v430_v41 = vmul.f32 0.5, %v731_v31  ;;  %744 = vtanh.f32 %v309_v7 }
  0x4f   :  { %618 = vst [vmem:[#allocation5 + $0x98] sm:$0xff] %v554_v32  ;;  %v493_v42 = vadd.f32 0.5, %v429_v33  ;;  %v431_v43 = vmul.f32 0.5, %v733_v39  ;;  %746 = vtanh.f32 %v310_v30  ;;  %v311_v45 = vmul.f32 %v247_v8, %v1055_v54 }
  0x50   :  { %v735_v46 = vpop.eup %734  ;;  %619 = vst [vmem:[#allocation5 + $0xa0] sm:$0xff] %v555_v13  ;;  %v556_v48 = vmul.f32 %v492_v40, %v1004_v49  ;;  %v494_v37 = vadd.f32 0.5, %v430_v41  ;;  %v312_v35 = vmul.f32 %v248_v38, %v1063_v60  ;;  %v185_v52 = vmul.f32 0.035686456, %v121_v22 }
  0x51   :  { %v737_v12 = vpop.eup %736  ;;  %v557_v36 = vmul.f32 %v493_v42, %v1006_v50  ;;  %v495_v58 = vadd.f32 0.5, %v431_v43  ;;  %v432_v9 = vmul.f32 0.5, %v735_v46  ;;  %748 = vtanh.f32 %v311_v45  ;;  %v1116_v46 = vld [vmem:[#allocation2 + $0x140] sm:$0xff] }
  0x52   :  { %v739_v63 = vpop.eup %738  ;;  %620 = vst [vmem:[#allocation5 + $0xa8] sm:$0xff] %v556_v48  ;;  %v558_v49 = vmul.f32 %v494_v37, %v1009_v56  ;;  %v433_v47 = vmul.f32 0.5, %v737_v12  ;;  %750 = vtanh.f32 %v312_v35  ;;  %v249_v4 = vadd.f32 0.7980869, %v185_v52  ;;  %v1119_v52 = vld [vmem:[#allocation2 + $0x148] sm:$0xff]  ;;  %v1121_v12 = vld [vmem:[#allocation2 + $0x150] sm:$0xff] }
  0x53   :  { %621 = vst [vmem:[#allocation5 + $0xb0] sm:$0xff] %v557_v36  ;;  %v559_v10 = vmul.f32 %v495_v58, %v1012_v61  ;;  %v496_v1 = vadd.f32 0.5, %v432_v9  ;;  %v434_v51 = vmul.f32 0.5, %v739_v63  ;;  %v122_v50 = vmul.f32 %v1085_v53, %v1085_v53  ;;  %v1125_v63 = vld [vmem:[#allocation2 + $0x158] sm:$0xff] }
  0x54   :  { %v741_v15 = vpop.eup %740  ;;  %622 = vst [vmem:[#allocation5 + $0xb8] sm:$0xff] %v558_v49  ;;  %v497_v55 = vadd.f32 0.5, %v433_v47  ;;  %v313_v57 = vmul.f32 %v249_v4, %v1068_v3  ;;  %v123_v16 = vmul.f32 %v1088_v59, %v1088_v59  ;;  %v124_v56 = vmul.f32 %v1090_v0, %v1090_v0 }
  0x55   :  { %623 = vst [vmem:[#allocation5 + $0xc0] sm:$0xff] %v559_v10  ;;  %v560_v61 = vmul.f32 %v496_v1, %v1021_v11  ;;  %v498_v19 = vadd.f32 0.5, %v434_v51  ;;  %v435_v20 = vmul.f32 0.5, %v741_v15  ;;  %v186_v22 = vmul.f32 0.035686456, %v122_v50  ;;  %v1134_v51 = vld [vmem:[#allocation2 + $0x160] sm:$0xff] }
  0x56   :  { %v561_v21 = vmul.f32 %v497_v55, %v1026_v2  ;;  %752 = vtanh.f32 %v313_v57  ;;  %v187_v23 = vmul.f32 0.035686456, %v123_v16  ;;  %v188_v62 = vmul.f32 0.035686456, %v124_v56  ;;  %v1140_v16 = vld [vmem:[#allocation2 + $0x168] sm:$0xff] }
  0x57   :  { %v743_v24 = vpop.eup %742  ;;  %624 = vst [vmem:[#allocation5 + $0xc8] sm:$0xff] %v560_v61  ;;  %v562_v25 = vmul.f32 %v498_v19, %v1028_v18  ;;  %v499_v7 = vadd.f32 0.5, %v435_v20  ;;  %v250_v26 = vadd.f32 0.7980869, %v186_v22  ;;  %v125_v5 = vmul.f32 %v1101_v17, %v1101_v17  ;;  %v1143_v22 = vld [vmem:[#allocation2 + $0x170] sm:$0xff] }
  0x58   :  { %v745_v11 = vpop.eup %744  ;;  %625 = vst [vmem:[#allocation5 + $0xd0] sm:$0xff] %v561_v21  ;;  %v436_v28 = vmul.f32 0.5, %v743_v24  ;;  %v251_v29 = vadd.f32 0.7980869, %v187_v23  ;;  %v252_v30 = vadd.f32 0.7980869, %v188_v62  ;;  %v126_v2 = vmul.f32 %v1104_v6, %v1104_v6 }
  0x59   :  { %v747_v8 = vpop.eup %746  ;;  %626 = vst [vmem:[#allocation5 + $0xd8] sm:$0xff] %v562_v25  ;;  %v563_v31 = vmul.f32 %v499_v7, %v1039_v27  ;;  %v437_v32 = vmul.f32 0.5, %v745_v11  ;;  %v314_v18 = vmul.f32 %v250_v26, %v1085_v53  ;;  %v189_v33 = vmul.f32 0.035686456, %v125_v5 }
  0x5a   :  { %v500_v38 = vadd.f32 0.5, %v436_v28  ;;  %v438_v39 = vmul.f32 0.5, %v747_v8  ;;  %v315_v13 = vmul.f32 %v251_v29, %v1088_v59  ;;  %v316_v40 = vmul.f32 %v252_v30, %v1090_v0 }
  0x5b   :  { %v749_v41 = vpop.eup %748  ;;  %627 = vst [vmem:[#allocation5 + $0xe0] sm:$0xff] %v563_v31  ;;  %v501_v42 = vadd.f32 0.5, %v437_v32  ;;  %754 = vtanh.f32 %v314_v18  ;;  %v253_v43 = vadd.f32 0.7980869, %v189_v33  ;;  %v190_v45 = vmul.f32 0.035686456, %v126_v2 }
  0x5c   :  { %v751_v48 = vpop.eup %750  ;;  %v564_v27 = vmul.f32 %v500_v38, %v1047_v14  ;;  %v502_v37 = vadd.f32 0.5, %v438_v39  ;;  %v439_v35 = vmul.f32 0.5, %v749_v41  ;;  %756 = vtanh.f32 %v315_v13 }
  0x5d   :  { %v565_v36 = vmul.f32 %v501_v42, %v1049_v44  ;;  %v440_v58 = vmul.f32 0.5, %v751_v48  ;;  %758 = vtanh.f32 %v316_v40  ;;  %v317_v9 = vmul.f32 %v253_v43, %v1101_v17  ;;  %v1157_v43 = vld [vmem:[#allocation2 + $0x178] sm:$0xff] }
  0x5e   :  { %628 = vst [vmem:[#allocation5 + $0xe8] sm:$0xff] %v564_v27  ;;  %v566_v49 = vmul.f32 %v502_v37, %v1052_v34  ;;  %v503_v47 = vadd.f32 0.5, %v439_v35  ;;  %v254_v14 = vadd.f32 0.7980869, %v190_v45  ;;  %v127_v4 = vmul.f32 %v1116_v46, %v1116_v46  ;;  %v1160_v35 = vld [vmem:[#allocation2 + $0x180] sm:$0xff] }
  0x5f   :  { %629 = vst [vmem:[#allocation5 + $0xf0] sm:$0xff] %v565_v36  ;;  %v504_v10 = vadd.f32 0.5, %v440_v58  ;;  %760 = vtanh.f32 %v317_v9  ;;  %v128_v44 = vmul.f32 %v1119_v52, %v1119_v52  ;;  %v129_v1 = vmul.f32 %v1121_v12, %v1121_v12  ;;  %v1162_v36 = vld [vmem:[#allocation2 + $0x188] sm:$0xff] }
  0x60   :  { %v753_v50 = vpop.eup %752  ;;  %630 = vst [vmem:[#allocation5 + $0xf8] sm:$0xff] %v566_v49  ;;  %v567_v34 = vmul.f32 %v503_v47, %v1055_v54  ;;  %v318_v15 = vmul.f32 %v254_v14, %v1104_v6  ;;  %v191_v55 = vmul.f32 0.035686456, %v127_v4  ;;  %v130_v57 = vmul.f32 %v1125_v63, %v1125_v63  ;;  %v1165_v47 = vld [vmem:[#allocation2 + $0x190] sm:$0xff] }
  0x61   :  { %v568_v56 = vmul.f32 %v504_v10, %v1063_v60  ;;  %v441_v61 = vmul.f32 0.5, %v753_v50  ;;  %v192_v19 = vmul.f32 0.035686456, %v128_v44  ;;  %v193_v20 = vmul.f32 0.035686456, %v129_v1  ;;  %v1171_v44 = vld [vmem:[#allocation2 + $0x198] sm:$0xff] }
  0x62   :  { %631 = vst [vmem:[#allocation5 + $0x100] sm:$0xff] %v567_v34  ;;  %762 = vtanh.f32 %v318_v15  ;;  %v255_v21 = vadd.f32 0.7980869, %v191_v55  ;;  %v194_v23 = vmul.f32 0.035686456, %v130_v57  ;;  %v131_v54 = vmul.f32 %v1134_v51, %v1134_v51 }
  0x63   :  { %632 = vst [vmem:[#allocation5 + $0x108] sm:$0xff] %v568_v56  ;;  %v505_v62 = vadd.f32 0.5, %v441_v61  ;;  %v256_v24 = vadd.f32 0.7980869, %v192_v19  ;;  %v257_v25 = vadd.f32 0.7980869, %v193_v20  ;;  %v132_v7 = vmul.f32 %v1140_v16, %v1140_v16 }
  0x64   :  { %v319_v60 = vmul.f32 %v255_v21, %v1116_v46  ;;  %v258_v26 = vadd.f32 0.7980869, %v194_v23  ;;  %v195_v5 = vmul.f32 0.035686456, %v131_v54  ;;  %v133_v11 = vmul.f32 %v1143_v22, %v1143_v22  ;;  %v1182_v61 = vld [vmem:[#allocation2 + $0x1a8] sm:$0xff] }
  0x65   :  { %v755_v28 = vpop.eup %754  ;;  %v569_v29 = vmul.f32 %v505_v62, %v1068_v3  ;;  %v320_v30 = vmul.f32 %v256_v24, %v1119_v52  ;;  %v321_v2 = vmul.f32 %v257_v25, %v1121_v12  ;;  %v196_v8 = vmul.f32 0.035686456, %v132_v7 }
  0x66   :  { %v757_v31 = vpop.eup %756  ;;  %v442_v32 = vmul.f32 0.5, %v755_v28  ;;  %764 = vtanh.f32 %v319_v60  ;;  %v322_v18 = vmul.f32 %v258_v26, %v1125_v63  ;;  %v259_v33 = vadd.f32 0.7980869, %v195_v5 }
  0x67   :  { %v759_v38 = vpop.eup %758  ;;  %633 = vst [vmem:[#allocation5 + $0x110] sm:$0xff] %v569_v29  ;;  %v443_v39 = vmul.f32 0.5, %v757_v31  ;;  %766 = vtanh.f32 %v320_v30  ;;  %v260_v13 = vadd.f32 0.7980869, %v196_v8  ;;  %v197_v40 = vmul.f32 0.035686456, %v133_v11 }
  0x68   :  { %v506_v41 = vadd.f32 0.5, %v442_v32  ;;  %v444_v42 = vmul.f32 0.5, %v759_v38  ;;  %768 = vtanh.f32 %v321_v2  ;;  %v323_v3 = vmul.f32 %v259_v33, %v1134_v51 }
  0x69   :  { %v761_v45 = vpop.eup %760  ;;  %v507_v48 = vadd.f32 0.5, %v443_v39  ;;  %770 = vtanh.f32 %v322_v18  ;;  %v324_v27 = vmul.f32 %v260_v13, %v1140_v16  ;;  %v261_v37 = vadd.f32 0.7980869, %v197_v40 }
  0x6a   :  { %v570_v58 = vmul.f32 %v506_v41, %v1085_v53  ;;  %v508_v9 = vadd.f32 0.5, %v444_v42  ;;  %v445_v49 = vmul.f32 0.5, %v761_v45  ;;  %772 = vtanh.f32 %v323_v3 }
  0x6b   :  { %v571_v14 = vmul.f32 %v507_v48, %v1088_v59  ;;  %774 = vtanh.f32 %v324_v27  ;;  %v325_v4 = vmul.f32 %v261_v37, %v1143_v22  ;;  %v134_v10 = vmul.f32 %v1157_v43, %v1157_v43  ;;  %v1178_v59 = vld [vmem:[#allocation2 + $0x1a0] sm:$0xff] }
  0x6c   :  { %v763_v1 = vpop.eup %762  ;;  %634 = vst [vmem:[#allocation5 + $0x118] sm:$0xff] %v570_v58  ;;  %v572_v50 = vmul.f32 %v508_v9, %v1090_v0  ;;  %v509_v53 = vadd.f32 0.5, %v445_v49  ;;  %v135_v34 = vmul.f32 %v1160_v35, %v1160_v35  ;;  %v136_v15 = vmul.f32 %v1162_v36, %v1162_v36  ;;  %v1199_v49 = vld [vmem:[#allocation2 + $0x1b0] sm:$0xff] }
  0x6d   :  { %635 = vst [vmem:[#allocation5 + $0x120] sm:$0xff] %v571_v14  ;;  %v446_v55 = vmul.f32 0.5, %v763_v1  ;;  %776 = vtanh.f32 %v325_v4  ;;  %v198_v57 = vmul.f32 0.035686456, %v134_v10  ;;  %v137_v56 = vmul.f32 %v1165_v47, %v1165_v47  ;;  %v1201_v14 = vld [vmem:[#allocation2 + $0x1b8] sm:$0xff] }
  0x6e   :  { %636 = vst [vmem:[#allocation5 + $0x128] sm:$0xff] %v572_v50  ;;  %v573_v0 = vmul.f32 %v509_v53, %v1101_v17  ;;  %v199_v19 = vmul.f32 0.035686456, %v135_v34  ;;  %v200_v20 = vmul.f32 0.035686456, %v136_v15  ;;  %v138_v21 = vmul.f32 %v1171_v44, %v1171_v44 }
  0x6f   :  { %v510_v23 = vadd.f32 0.5, %v446_v55  ;;  %v262_v54 = vadd.f32 0.7980869, %v198_v57  ;;  %v201_v62 = vmul.f32 0.035686456, %v137_v56  ;;  %v139_v24 = vmul.f32 %v1178_v59, %v1178_v59  ;;  %v1207_v55 = vld [vmem:[#allocation2 + $0x1c8] sm:$0xff] }
  0x70   :  { %v765_v25 = vpop.eup %764  ;;  %637 = vst [vmem:[#allocation5 + $0x130] sm:$0xff] %v573_v0  ;;  %v263_v7 = vadd.f32 0.7980869, %v199_v19  ;;  %v264_v60 = vadd.f32 0.7980869, %v200_v20  ;;  %v140_v5 = vmul.f32 %v1182_v61, %v1182_v61  ;;  %v142_v0 = vmul.f32 %v1201_v14, %v1201_v14  ;;  %v1214_v19 = vld [vmem:[#allocation2 + $0x1d0] sm:$0xff] }
  0x71   :  { %v202_v26 = vmul.f32 0.035686456, %v138_v21  ;;  %v767_v17 = vpop.eup %766  ;;  %v574_v11 = vmul.f32 %v510_v23, %v1104_v6  ;;  %v447_v28 = vmul.f32 0.5, %v765_v25  ;;  %v326_v29 = vmul.f32 %v262_v54, %v1157_v43 }
  0x72   :  { %v265_v30 = vadd.f32 0.7980869, %v201_v62  ;;  %v769_v2 = vpop.eup %768  ;;  %v448_v8 = vmul.f32 0.5, %v767_v17  ;;  %v327_v31 = vmul.f32 %v263_v7, %v1160_v35  ;;  %v328_v32 = vmul.f32 %v264_v60, %v1162_v36 }
  0x73   :  { %v266_v18 = vadd.f32 0.7980869, %v202_v26  ;;  %v771_v33 = vpop.eup %770  ;;  %638 = vst [vmem:[#allocation5 + $0x138] sm:$0xff] %v574_v11  ;;  %v511_v38 = vadd.f32 0.5, %v447_v28  ;;  %v449_v39 = vmul.f32 0.5, %v769_v2  ;;  %778 = vtanh.f32 %v326_v29 }
  0x74   :  { %v329_v13 = vmul.f32 %v265_v30, %v1165_v47  ;;  %v773_v40 = vpop.eup %772  ;;  %v512_v6 = vadd.f32 0.5, %v448_v8  ;;  %v450_v41 = vmul.f32 0.5, %v771_v33  ;;  %780 = vtanh.f32 %v327_v31 }
  0x75   :  { %v330_v42 = vmul.f32 %v266_v18, %v1171_v44  ;;  %v775_v3 = vpop.eup %774  ;;  %v575_v45 = vmul.f32 %v511_v38, %v1116_v46  ;;  %v513_v48 = vadd.f32 0.5, %v449_v39  ;;  %v451_v27 = vmul.f32 0.5, %v773_v40  ;;  %v1204_v46 = vld [vmem:[#allocation2 + $0x1c0] sm:$0xff] }
  0x76   :  { %782 = vtanh.f32 %v328_v32  ;;  %v576_v37 = vmul.f32 %v512_v6, %v1119_v52  ;;  %v514_v58 = vadd.f32 0.5, %v450_v41  ;;  %v452_v9 = vmul.f32 0.5, %v775_v3 }
  0x77   :  { %784 = vtanh.f32 %v329_v13  ;;  %v777_v4 = vpop.eup %776  ;;  %639 = vst [vmem:[#allocation5 + $0x140] sm:$0xff] %v575_v45  ;;  %v577_v10 = vmul.f32 %v513_v48, %v1121_v12  ;;  %v515_v1 = vadd.f32 0.5, %v451_v27  ;;  %v203_v50 = vmul.f32 0.035686456, %v139_v24  ;;  %v1230_v45 = vld [vmem:[#allocation2 + $0x1d8] sm:$0xff] }
  0x78   :  { %786 = vtanh.f32 %v330_v42  ;;  %640 = vst [vmem:[#allocation5 + $0x148] sm:$0xff] %v576_v37  ;;  %v578_v53 = vmul.f32 %v514_v58, %v1125_v63  ;;  %v516_v52 = vadd.f32 0.5, %v452_v9  ;;  %v453_v34 = vmul.f32 0.5, %v777_v4  ;;  %v1233_v58 = vld [vmem:[#allocation2 + $0x1e0] sm:$0xff]  ;;  %v1235_v9 = vld [vmem:[#allocation2 + $0x1e8] sm:$0xff] }
  0x79   :  { %v204_v15 = vmul.f32 0.035686456, %v140_v5  ;;  %641 = vst [vmem:[#allocation5 + $0x150] sm:$0xff] %v577_v10  ;;  %v579_v57 = vmul.f32 %v515_v1, %v1134_v51  ;;  %v267_v56 = vadd.f32 0.7980869, %v203_v50  ;;  %v141_v12 = vmul.f32 %v1199_v49, %v1199_v49  ;;  %v1239_v50 = vld [vmem:[#allocation2 + $0x1f0] sm:$0xff] }
  0x7a   :  { %642 = vst [vmem:[#allocation5 + $0x158] sm:$0xff] %v578_v53  ;;  %v580_v63 = vmul.f32 %v516_v52, %v1140_v16  ;;  %v517_v20 = vadd.f32 0.5, %v453_v34  ;;  %v143_v23 = vmul.f32 %v1204_v46, %v1204_v46  ;;  %v206_v62 = vmul.f32 0.035686456, %v142_v0  ;;  %v1241_v53 = vld [vmem:[#allocation2 + $0x1f8] sm:$0xff] }
  0x7b   :  { %v268_v21 = vadd.f32 0.7980869, %v204_v15  ;;  %643 = vst [vmem:[#allocation5 + $0x160] sm:$0xff] %v579_v57  ;;  %v331_v51 = vmul.f32 %v267_v56, %v1178_v59  ;;  %v205_v54 = vmul.f32 0.035686456, %v141_v12  ;;  %v144_v24 = vmul.f32 %v1207_v55, %v1207_v55 }
  0x7c   :  { %644 = vst [vmem:[#allocation5 + $0x168] sm:$0xff] %v580_v63  ;;  %v581_v25 = vmul.f32 %v517_v20, %v1143_v22  ;;  %v207_v60 = vmul.f32 0.035686456, %v143_v23  ;;  %v145_v16 = vmul.f32 %v1214_v19, %v1214_v19  ;;  %v270_v17 = vadd.f32 0.7980869, %v206_v62 }
  0x7d   :  { %v332_v7 = vmul.f32 %v268_v21, %v1182_v61  ;;  %v779_v26 = vpop.eup %778  ;;  %788 = vtanh.f32 %v331_v51  ;;  %v269_v5 = vadd.f32 0.7980869, %v205_v54  ;;  %v208_v11 = vmul.f32 0.035686456, %v144_v24 }
  0x7e   :  { %v781_v28 = vpop.eup %780  ;;  %645 = vst [vmem:[#allocation5 + $0x170] sm:$0xff] %v581_v25  ;;  %v454_v29 = vmul.f32 0.5, %v779_v26  ;;  %v271_v30 = vadd.f32 0.7980869, %v207_v60  ;;  %v209_v2 = vmul.f32 0.035686456, %v145_v16  ;;  %v334_v32 = vmul.f32 %v270_v17, %v1201_v14 }
  0x7f   :  { %790 = vtanh.f32 %v332_v7  ;;  %v455_v31 = vmul.f32 0.5, %v781_v28  ;;  %v333_v22 = vmul.f32 %v269_v5, %v1199_v49  ;;  %v272_v18 = vadd.f32 0.7980869, %v208_v11 }
  0x80   :  { %v783_v8 = vpop.eup %782  ;;  %v518_v38 = vadd.f32 0.5, %v454_v29  ;;  %v335_v13 = vmul.f32 %v271_v30, %v1204_v46  ;;  %v273_v40 = vadd.f32 0.7980869, %v209_v2  ;;  %v146_v34 = vmul.f32 %v1230_v45, %v1230_v45 }
  0x81   :  { %v785_v33 = vpop.eup %784  ;;  %v456_v39 = vmul.f32 0.5, %v783_v8  ;;  %v519_v41 = vadd.f32 0.5, %v455_v31  ;;  %792 = vtanh.f32 %v333_v22  ;;  %v336_v3 = vmul.f32 %v272_v18, %v1207_v55 }
  0x82   :  { %v787_v6 = vpop.eup %786  ;;  %v457_v42 = vmul.f32 0.5, %v785_v33  ;;  %v582_v48 = vmul.f32 %v518_v38, %v1157_v43  ;;  %794 = vtanh.f32 %v334_v32  ;;  %v337_v1 = vmul.f32 %v273_v40, %v1214_v19 }
  0x83   :  { %v520_v27 = vadd.f32 0.5, %v456_v39  ;;  %v458_v37 = vmul.f32 0.5, %v787_v6  ;;  %v583_v4 = vmul.f32 %v519_v41, %v1160_v35  ;;  %796 = vtanh.f32 %v335_v13 }
  0x84   :  { %v521_v10 = vadd.f32 0.5, %v457_v42  ;;  %646 = vst [vmem:[#allocation5 + $0x178] sm:$0xff] %v582_v48  ;;  %798 = vtanh.f32 %v336_v3  ;;  %v147_v35 = vmul.f32 %v1233_v58, %v1233_v58  ;;  %v148_v57 = vmul.f32 %v1235_v9, %v1235_v9 }
  0x85   :  { %v584_v43 = vmul.f32 %v520_v27, %v1162_v36  ;;  %v522_v52 = vadd.f32 0.5, %v458_v37  ;;  %647 = vst [vmem:[#allocation5 + $0x180] sm:$0xff] %v583_v4  ;;  %800 = vtanh.f32 %v337_v1  ;;  %v210_v12 = vmul.f32 0.035686456, %v146_v34 }
  0x86   :  { %v585_v15 = vmul.f32 %v521_v10, %v1165_v47  ;;  %v149_v36 = vmul.f32 %v1239_v50, %v1239_v50  ;;  %v150_v0 = vmul.f32 %v1241_v53, %v1241_v53  ;;  %v211_v47 = vmul.f32 0.035686456, %v147_v35 }
  0x87   :  { %648 = vst [vmem:[#allocation5 + $0x188] sm:$0xff] %v584_v43  ;;  %v586_v56 = vmul.f32 %v522_v52, %v1171_v44  ;;  %v789_v63 = vpop.eup %788  ;;  %v212_v20 = vmul.f32 0.035686456, %v148_v57  ;;  %v274_v51 = vadd.f32 0.7980869, %v210_v12 }
  0x88   :  { %649 = vst [vmem:[#allocation5 + $0x190] sm:$0xff] %v585_v15  ;;  %v459_v23 = vmul.f32 0.5, %v789_v63  ;;  %v213_v54 = vmul.f32 0.035686456, %v149_v36  ;;  %v275_v24 = vadd.f32 0.7980869, %v211_v47 }
  0x89   :  { %v791_v21 = vpop.eup %790  ;;  %650 = vst [vmem:[#allocation5 + $0x198] sm:$0xff] %v586_v56  ;;  %v276_v25 = vadd.f32 0.7980869, %v212_v20  ;;  %v338_v7 = vmul.f32 %v274_v51, %v1230_v45  ;;  %v214_v16 = vmul.f32 0.035686456, %v150_v0 }
  0x8a   :  { %v460_v62 = vmul.f32 0.5, %v791_v21  ;;  %v523_v44 = vadd.f32 0.5, %v459_v23  ;;  %v277_v60 = vadd.f32 0.7980869, %v213_v54  ;;  %v339_v17 = vmul.f32 %v275_v24, %v1233_v58 }
  0x8b   :  { %v793_v26 = vpop.eup %792  ;;  %v340_v11 = vmul.f32 %v276_v25, %v1235_v9  ;;  %802 = vtanh.f32 %v338_v7  ;;  %v278_v32 = vadd.f32 0.7980869, %v214_v16 }
  0x8c   :  { %v524_v5 = vadd.f32 0.5, %v460_v62  ;;  %v795_v28 = vpop.eup %794  ;;  %v587_v29 = vmul.f32 %v523_v44, %v1178_v59  ;;  %v461_v30 = vmul.f32 0.5, %v793_v26  ;;  %v341_v2 = vmul.f32 %v277_v60, %v1239_v50 }
  0x8d   :  { %v797_v8 = vpop.eup %796  ;;  %v462_v22 = vmul.f32 0.5, %v795_v28  ;;  %804 = vtanh.f32 %v339_v17  ;;  %v342_v59 = vmul.f32 %v278_v32, %v1241_v53 }
  0x8e   :  { %v588_v31 = vmul.f32 %v524_v5, %v1182_v61  ;;  %v799_v18 = vpop.eup %798  ;;  %651 = vst [vmem:[#allocation5 + $0x1a0] sm:$0xff] %v587_v29  ;;  %v525_v33 = vadd.f32 0.5, %v461_v30  ;;  %v463_v38 = vmul.f32 0.5, %v797_v8  ;;  %806 = vtanh.f32 %v340_v11 }
  0x8f   :  { %v801_v39 = vpop.eup %800  ;;  %v526_v13 = vadd.f32 0.5, %v462_v22  ;;  %v464_v40 = vmul.f32 0.5, %v799_v18  ;;  %808 = vtanh.f32 %v341_v2 }
  0x90   :  { %652 = vst [vmem:[#allocation5 + $0x1a8] sm:$0xff] %v588_v31  ;;  %v589_v6 = vmul.f32 %v525_v33, %v1199_v49  ;;  %v527_v41 = vadd.f32 0.5, %v463_v38  ;;  %v465_v42 = vmul.f32 0.5, %v801_v39  ;;  %810 = vtanh.f32 %v342_v59 }
  0x91   :  { %v590_v61 = vmul.f32 %v526_v13, %v1201_v14  ;;  %v528_v3 = vadd.f32 0.5, %v464_v40 }
  0x92   :  { %653 = vst [vmem:[#allocation5 + $0x1b0] sm:$0xff] %v589_v6  ;;  %v591_v48 = vmul.f32 %v527_v41, %v1204_v46  ;;  %v529_v27 = vadd.f32 0.5, %v465_v42 }
  0x93   :  { %654 = vst [vmem:[#allocation5 + $0x1b8] sm:$0xff] %v590_v61  ;;  %v592_v37 = vmul.f32 %v528_v3, %v1207_v55 }
  0x94   :  { %655 = vst [vmem:[#allocation5 + $0x1c0] sm:$0xff] %v591_v48  ;;  %v593_v4 = vmul.f32 %v529_v27, %v1214_v19 }
  0x95   :  { %656 = vst [vmem:[#allocation5 + $0x1c8] sm:$0xff] %v592_v37  ;;  %v803_v10 = vpop.eup %802 }
  0x96   :  { %657 = vst [vmem:[#allocation5 + $0x1d0] sm:$0xff] %v593_v4  ;;  %v466_v1 = vmul.f32 0.5, %v803_v10 }
  0x97   :  { %v805_v49 = vpop.eup %804 }
  0x98   :  { %v807_v43 = vpop.eup %806  ;;  %v467_v52 = vmul.f32 0.5, %v805_v49  ;;  %v530_v34 = vadd.f32 0.5, %v466_v1 }
  0x99   :  { %v809_v14 = vpop.eup %808  ;;  %v468_v15 = vmul.f32 0.5, %v807_v43 }
  0x9a   :  { %v531_v35 = vadd.f32 0.5, %v467_v52  ;;  %v469_v57 = vmul.f32 0.5, %v809_v14  ;;  %v811_v46 = vpop.eup %810  ;;  %v594_v56 = vmul.f32 %v530_v34, %v1230_v45 }
  0x9b   :  { %v532_v12 = vadd.f32 0.5, %v468_v15  ;;  %v470_v19 = vmul.f32 0.5, %v811_v46 }
  0x9c   :  { %v595_v55 = vmul.f32 %v531_v35, %v1233_v58  ;;  %v533_v36 = vadd.f32 0.5, %v469_v57  ;;  %658 = vst [vmem:[#allocation5 + $0x1d8] sm:$0xff] %v594_v56 }
  0x9d   :  { %v596_v0 = vmul.f32 %v532_v12, %v1235_v9  ;;  %v534_v47 = vadd.f32 0.5, %v470_v19 }
  0x9e   :  { %659 = vst [vmem:[#allocation5 + $0x1e0] sm:$0xff] %v595_v55  ;;  %v597_v63 = vmul.f32 %v533_v36, %v1239_v50 }
  0x9f   :  { %660 = vst [vmem:[#allocation5 + $0x1e8] sm:$0xff] %v596_v0  ;;  %v598_v20 = vmul.f32 %v534_v47, %v1241_v53 }
  0xa0   :  { %661 = vst [vmem:[#allocation5 + $0x1f0] sm:$0xff] %v597_v63 }
  0xa1   :  { %662 = vst [vmem:[#allocation5 + $0x1f8] sm:$0xff] %v598_v20 }
  0xa2   :  { %845 = shalt.err (!%p842_p12)
}
  0xa3   :  { %s846_s24 = scalar_lea.hbm %s1289_s1, 8192 }
  0xa4   :  { %p847_p13 = scmp.ne.s32.totalorder %s1289_s1, %s846_s24  ;;  %p850_p0 = scmp.lt.u32.totalorder %s846_s24, %s1289_s1 }
  0xa6   :  { %p852_p1 = pnand %p850_p0, %p847_p13 }
  0xa8   :  { %855 = shalt.err (!%p852_p1)
}
  0xa9   :  { %674 = dma.vmem_to_hbm [thread:$0]  %s669_s20, 8192, %s1289_s1, [#allocation4], %s861_s16, %s861_s16, %s862_s17  }
  0xaa   :  { %858 = dma.done.wait [#allocation4], 8192  }
  0xab   :  { %859 = vsyncadd [#allocation4], 4294959104 }
  0xac   :  { %678 = vsyncpa [#allocation3], 1 }
  0xad   :  { %679 = vsyncpa [#allocation4], 1 }

</bundles_post_ra>
